<compile_context>
chip_gen: v5e
topology: v5e:2x2
jax: 0.10.0
libtpu: 0.0.40
codegen_flags: <defaults>
</compile_context>

<pallas_src>
import functools

import jax
import jax.numpy as jnp
from jax.experimental import pallas as pl
from jax.experimental.pallas import tpu as pltpu

_EPS = 1e-8  # torch.nn.functional.cosine_similarity default eps


def _cos_attn_kernel(x_ref, pt_ref, p_ref, pn_ref, o_ref):
    # x_ref : (bm, Dp)  last-step decoder output tile, native dtype
    # pt_ref: (Dp, N)   pre-transposed speaker profiles (static), native dtype
    # p_ref : (N, Dp)   speaker profiles (static), native dtype
    # pn_ref: (1, N)    precomputed profile L2 norms, f32
    # o_ref : (bm, Dp)  attended speaker embedding tile, input dtype
    x = x_ref[...]

    # ||x|| per row in f32 (only the grid-varying operand is upcast; padded
    # zero columns contribute nothing).
    xf = x.astype(jnp.float32)
    xn = jnp.sqrt(jnp.sum(xf * xf, axis=-1, keepdims=True))              # (bm, 1)

    # <x, p>: (bm, Dp) @ (Dp, N) on the MXU, native dtype in / f32 accumulate,
    # transpose-free thanks to the pre-transposed static profile copy.
    dots = jnp.dot(x, pt_ref[...], preferred_element_type=jnp.float32)   # (bm, N)

    # torch.cosine_similarity clamps the *product* of the two norms by eps.
    denom = jnp.maximum(xn * pn_ref[...], _EPS)                          # (bm, N)
    cos = dots * pl.reciprocal(denom, approx=True)                       # EUP rcp

    # Softmax over N (exp on EUP; approx reciprocal for the denominator).
    m = jnp.max(cos, axis=-1, keepdims=True)
    e = jnp.exp(cos - m)
    w = e * pl.reciprocal(jnp.sum(e, axis=-1, keepdims=True), approx=True)

    # Weighted sum of profiles: (bm, N) @ (N, Dp) on the MXU.
    out = jnp.dot(w.astype(p_ref.dtype), p_ref[...],
                  preferred_element_type=jnp.float32)
    o_ref[...] = out.astype(o_ref.dtype)


def _pick_bm(B: int) -> int:
    """Batch tile: large enough to feed the 128/256-row MXU, sublane-aligned,
    and leaving >= 2 grid blocks when B permits so v7x's second TC has work."""
    if B <= 8 or B % 8 != 0:
        return B  # single full-extent block (only alignment-legal choice)
    for bm in (256, 128, 64, 32, 16, 8):
        if bm < B and B % bm == 0:
            return bm
    return B


@functools.partial(jax.jit, static_argnames=("d_valid",))
def _cos_attn_forward(spk_decoder_out, p_pad, p_t, pn, *, d_valid):
    """spk_decoder_out: (B, T, D); preprocessed profile args -> (B, 1, D)."""
    B, T, D = spk_decoder_out.shape
    N, Dp = p_pad.shape
    assert D == d_valid, "decoder hidden dim must match profile dim"

    # Slice the last timestep first, then pad only (B, D) -> (B, Dp):
    # T-times less HBM traffic than padding the whole tensor, and the per-block
    # DMA is contiguous and lane-dense.
    x_last = spk_decoder_out[:, -1, :]
    if Dp != D:
        x_last = jnp.pad(x_last, ((0, 0), (0, Dp - D)))

    bm = _pick_bm(B)
    grid = (B // bm,)

    in_item = jnp.dtype(spk_decoder_out.dtype).itemsize
    p_item = jnp.dtype(p_pad.dtype).itemsize

    # VMEM budget: x/out tiles double-buffered, static profile copies
    # single-buffered, plus f32 intermediates. Capped below v7x's 64 MiB.
    est = (4 * bm * Dp * in_item            # x + out tiles, double-buffered
           + 2 * N * Dp * p_item            # p_t + p, single-buffered
           + max(N, 128) * 4                # pn
           + 8 * bm * max(N, 128) * 4       # f32 (bm, N) intermediates
           + 2 * bm * Dp * 4)               # f32 output temp
    vmem_limit = int(min(max(2 * est, 8 << 20), 48 << 20))

    cost = pl.CostEstimate(
        flops=4 * B * N * Dp + 10 * B * N,
        transcendentals=2 * B * N + 2 * B,
        bytes_accessed=2 * B * Dp * in_item + 2 * N * Dp * p_item + N * 4,
    )

    out = pl.pallas_call(
        _cos_attn_kernel,
        out_shape=jax.ShapeDtypeStruct((B, Dp), spk_decoder_out.dtype),
        grid=grid,
        in_specs=[
            pl.BlockSpec((bm, Dp), lambda i: (i, 0)),
            # Grid-invariant static operands: single-buffered to halve their
            # VMEM footprint (their index_map is constant, never re-fetched).
            pl.BlockSpec((Dp, N), lambda i: (0, 0), pipeline_mode=pl.Buffered(1)),
            pl.BlockSpec((N, Dp), lambda i: (0, 0), pipeline_mode=pl.Buffered(1)),
            pl.BlockSpec((1, N), lambda i: (0, 0), pipeline_mode=pl.Buffered(1)),
        ],
        out_specs=pl.BlockSpec((bm, Dp), lambda i: (i, 0)),
        compiler_params=pltpu.CompilerParams(
            dimension_semantics=("parallel",),
            vmem_limit_bytes=vmem_limit,
        ),
        cost_estimate=cost,
    )(x_last, p_t, p_pad, pn)

    return out[:, None, :d_valid]                                    # (B, 1, D)


def make_cosine_distance_attention_allspk(profile):
    """'Module init': one-time static preprocessing of the speaker profile
    matrix (lane-pad feature dim, pre-transpose, pre-compute L2 norms)."""
    profile = jnp.asarray(profile)
    N, D = profile.shape
    Dp = max(128, ((D + 127) // 128) * 128)
    p_pad = jnp.pad(profile, ((0, 0), (0, Dp - D))) if Dp != D else profile
    # Pre-transposed copy so the first matmul is transpose-free in-kernel.
    p_t = jnp.asarray(jnp.swapaxes(p_pad, 0, 1))                     # (Dp, N)
    pn = jnp.sqrt(jnp.sum(profile.astype(jnp.float32) ** 2, axis=-1))[None, :]

    def forward(spk_decoder_out):
        return _cos_attn_forward(spk_decoder_out, p_pad, p_t, pn, d_valid=int(D))

    return forward


def _reference(spk_decoder_out, profile):
    """Pure-JAX ground truth with torch's product-clamped eps semantics."""
    x = spk_decoder_out[:, -1:, :].astype(jnp.float32)               # (B, 1, D)
    p = profile.astype(jnp.float32)                                  # (N, D)
    xn = jnp.linalg.norm(x, axis=-1, keepdims=True)                  # (B, 1, 1)
    pn = jnp.linalg.norm(p, axis=-1)                                 # (N,)
    dots = jnp.einsum("btd,nd->btn", x, p)                           # (B, 1, N)
    cos = dots / jnp.maximum(xn * pn[None, None, :], _EPS)
    w = jax.nn.softmax(cos, axis=-1)
    return jnp.einsum("btn,nd->btd", w, p)


if __name__ == "__main__":
    key = jax.random.PRNGKey(0)
    k1, k2 = jax.random.split(key)

    B, T, D = 2, 8, 32      # batch, decoder steps, hidden
    N = 16                  # number of speaker profiles (stands in for allspk_emb.npy)

    spk_decoder_out = jax.random.normal(k1, (B, T, D), dtype=jnp.float32)
    # Deterministic synthetic speaker-profile matrix (replaces the .npy file).
    profile = jax.random.normal(k2, (N, D), dtype=jnp.float32)

    attn = make_cosine_distance_attention_allspk(profile)
    out = jax.block_until_ready(attn(spk_decoder_out))

    ref = _reference(spk_decoder_out, profile)
    assert out.shape == (B, 1, D)
    assert out.dtype == spk_decoder_out.dtype
    # Tolerance budget covers the two approx (~2^-12 rel err) EUP reciprocals.
    assert jnp.allclose(out, ref, atol=3e-3, rtol=3e-3)

    print("KERNEL_OK")
</pallas_src>

<mosaic_0001>
module attributes {stable_mosaic.version = 11 : i64} {
  func.func @_cos_attn_kernel(%arg0: i32, %arg1: memref<2x128xf32, #tpu.memory_space<vmem>>, %arg2: memref<128x16xf32, #tpu.memory_space<vmem>>, %arg3: memref<16x128xf32, #tpu.memory_space<vmem>>, %arg4: memref<1x16xf32, #tpu.memory_space<vmem>>, %arg5: memref<2x128xf32, #tpu.memory_space<vmem>>) attributes {dimension_semantics = [#tpu.dimension_semantics<parallel>], iteration_bounds = array<i64: 1>, scalar_prefetch = 0 : i64, scratch_operands = 0 : i64, tpu.core_type = #tpu.core_type<tc>, window_params = [{transform_indices = @transform_0, window_bounds = array<i64: 2, 128>}, {pipeline_mode = #tpu.pipeline_mode<synchronous>, transform_indices = @transform_1, window_bounds = array<i64: 128, 16>}, {pipeline_mode = #tpu.pipeline_mode<synchronous>, transform_indices = @transform_2, window_bounds = array<i64: 16, 128>}, {pipeline_mode = #tpu.pipeline_mode<synchronous>, transform_indices = @transform_3, window_bounds = array<i64: 1, 16>}, {transform_indices = @transform_4, window_bounds = array<i64: 2, 128>}]} {
    %c0 = arith.constant 0 : index
    %c0_0 = arith.constant 0 : index
    %0 = vector.load %arg1[%c0, %c0_0] : memref<2x128xf32, #tpu.memory_space<vmem>>, vector<2x128xf32>
    %1 = arith.mulf %0, %0 : vector<2x128xf32>
    %cst = arith.constant dense<0.000000e+00> : vector<2xf32>
    %2 = vector.multi_reduction <add>, %1, %cst [1] : vector<2x128xf32> to vector<2xf32>
    %3 = vector.shape_cast %2 : vector<2xf32> to vector<2x1xf32>
    %4 = math.sqrt %3 : vector<2x1xf32>
    %c0_1 = arith.constant 0 : index
    %c0_2 = arith.constant 0 : index
    %5 = vector.load %arg2[%c0_1, %c0_2] : memref<128x16xf32, #tpu.memory_space<vmem>>, vector<128x16xf32>
    %cst_3 = arith.constant dense<0.000000e+00> : vector<2x16xf32>
    %6 = tpu.matmul %0, %5, %cst_3 {dimension_numbers = #tpu.dot_dimension_numbers<[1], [0], [0], [1], [0, 0, 1, 1], [], []>} : vector<2x128xf32>, vector<128x16xf32>, vector<2x16xf32> -> vector<2x16xf32>
    %c0_4 = arith.constant 0 : index
    %c0_5 = arith.constant 0 : index
    %7 = vector.load %arg4[%c0_4, %c0_5] : memref<1x16xf32, #tpu.memory_space<vmem>>, vector<1x16xf32>
    %8 = vector.broadcast %4 : vector<2x1xf32> to vector<2x16xf32>
    %9 = vector.broadcast %7 : vector<1x16xf32> to vector<2x16xf32>
    %10 = arith.mulf %8, %9 : vector<2x16xf32>
    %cst_6 = arith.constant 9.99999993E-9 : f32
    %11 = vector.broadcast %cst_6 : f32 to vector<2x16xf32>
    %12 = arith.maximumf %10, %11 : vector<2x16xf32>
    %13 = tpu.reciprocal %12 {approx = true} : vector<2x16xf32> -> vector<2x16xf32>
    %14 = arith.mulf %6, %13 : vector<2x16xf32>
    %cst_7 = arith.constant dense<0xFF800000> : vector<2xf32>
    %15 = vector.multi_reduction <maximumf>, %14, %cst_7 [1] : vector<2x16xf32> to vector<2xf32>
    %16 = vector.shape_cast %15 : vector<2xf32> to vector<2x1xf32>
    %17 = vector.broadcast %16 : vector<2x1xf32> to vector<2x16xf32>
    %18 = arith.subf %14, %17 : vector<2x16xf32>
    %19 = math.exp %18 : vector<2x16xf32>
    %cst_8 = arith.constant dense<0.000000e+00> : vector<2xf32>
    %20 = vector.multi_reduction <add>, %19, %cst_8 [1] : vector<2x16xf32> to vector<2xf32>
    %21 = vector.shape_cast %20 : vector<2xf32> to vector<2x1xf32>
    %22 = tpu.reciprocal %21 {approx = true} : vector<2x1xf32> -> vector<2x1xf32>
    %23 = vector.broadcast %22 : vector<2x1xf32> to vector<2x16xf32>
    %24 = arith.mulf %19, %23 : vector<2x16xf32>
    %c0_9 = arith.constant 0 : index
    %c0_10 = arith.constant 0 : index
    %25 = vector.load %arg3[%c0_9, %c0_10] : memref<16x128xf32, #tpu.memory_space<vmem>>, vector<16x128xf32>
    %cst_11 = arith.constant dense<0.000000e+00> : vector<2x128xf32>
    %26 = tpu.matmul %24, %25, %cst_11 {dimension_numbers = #tpu.dot_dimension_numbers<[1], [0], [0], [1], [0, 0, 1, 1], [], []>} : vector<2x16xf32>, vector<16x128xf32>, vector<2x128xf32> -> vector<2x128xf32>
    %c0_12 = arith.constant 0 : index
    %c0_13 = arith.constant 0 : index
    %27 = vector.load %arg5[%c0_12, %c0_13] : memref<2x128xf32, #tpu.memory_space<vmem>>, vector<2x128xf32>
    tpu.vector_store %arg5[%c0_12, %c0_13], %26 {strides = array<i32>} : memref<2x128xf32, #tpu.memory_space<vmem>>, vector<2x128xf32>,
    return
  }
  func.func @transform_0(%arg0: i32) -> (i32, i32) {
    %c0_i32 = arith.constant 0 : i32
    %c0_i32_0 = arith.constant 0 : i32
    return %arg0, %c0_i32 : i32, i32
  }
  func.func @transform_1(%arg0: i32) -> (i32, i32) {
    %c0_i32 = arith.constant 0 : i32
    %c0_i32_0 = arith.constant 0 : i32
    %c0_i32_1 = arith.constant 0 : i32
    return %c0_i32, %c0_i32_0 : i32, i32
  }
  func.func @transform_2(%arg0: i32) -> (i32, i32) {
    %c0_i32 = arith.constant 0 : i32
    %c0_i32_0 = arith.constant 0 : i32
    %c0_i32_1 = arith.constant 0 : i32
    return %c0_i32, %c0_i32_0 : i32, i32
  }
  func.func @transform_3(%arg0: i32) -> (i32, i32) {
    %c0_i32 = arith.constant 0 : i32
    %c0_i32_0 = arith.constant 0 : i32
    %c0_i32_1 = arith.constant 0 : i32
    return %c0_i32, %c0_i32_0 : i32, i32
  }
  func.func @transform_4(%arg0: i32) -> (i32, i32) {
    %c0_i32 = arith.constant 0 : i32
    %c0_i32_0 = arith.constant 0 : i32
    return %arg0, %c0_i32 : i32, i32
  }
}

</mosaic_0001>

<bundles_post_ra>
// kernel: _cos_attn_forward.1
= control target key start
LH: loop header
LB: loop body
LE: loop exit
PB: predicated region body
PF: predicated region fallthrough
CT: control target
= control target key end

     0   :  { %vm20_vm0 = vcmask 1041408   ;;  %s261_s0 = inlined_call_operand.vmem [shape: f32[2,128], index: 0, kind: input, shape index: {}]   ;;  %s262_s1 = inlined_call_operand.vmem [shape: f32[128,16], index: 1, kind: input, shape index: {}]   ;;  %s263_s2 = inlined_call_operand.vmem [shape: f32[16,128], index: 2, kind: input, shape index: {}]   ;;  %s264_s3 = inlined_call_operand.vmem [shape: f32[1,16], index: 3, kind: input, shape index: {}]   ;;  %s265_s4 = inlined_call_operand.hbm [shape: f32[2,128], index: 4, kind: output, shape index: {}]  }
   0x1   :  { %v51_v0 = vld [vmem:[%s262_s1 + $0x78] sm:$0xff]  ;;  %v50_v1 = vld [vmem:[%s262_s1 + $0x70] sm:$0xff]  ;;  %v18_v2 = vld [vmem:[%s261_s0] sm:$0x3] }
   0x2   :  { %52 = vmatpush.msra.mxu0 %v51_v0  ;;  %v19_v3 = vmul.f32 %v18_v2, %v18_v2  ;;  %v49_v4 = vld [vmem:[%s262_s1 + $0x68] sm:$0xff]  ;;  %v48_v6 = vld [vmem:[%s262_s1 + $0x60] sm:$0xff]  ;;  %v47_v7 = vld [vmem:[%s262_s1 + $0x58] sm:$0xff] }
   0x4   :  { %53 = vmatpush.msra.mxu0 %v50_v1  ;;  %v21_v5 = vsel %vm20_vm0, %v19_v3, 0.0 }
   0x5   :  { %22 = vadd.xlane.f32.xlu0 %v21_v5 }
   0x6   :  { %54 = vmatpush.msra.mxu0 %v49_v4 }
   0x7   :  { %9 = vsyncpa [#allocation3], 0  ;;  %v46_v8 = vld [vmem:[%s262_s1 + $0x50] sm:$0xff]  ;;  %v45_v9 = vld [vmem:[%s262_s1 + $0x48] sm:$0xff]  ;;  %vm80_vm3 = vcmask 123904   ;;  %vm94_vm4 = vcmask 130048  }
   0x8   :  { %55 = vmatpush.msra.mxu0 %v48_v6  ;;  %v44_v10 = vld [vmem:[%s262_s1 + $0x40] sm:$0xff]  ;;  %v43_v11 = vld [vmem:[%s262_s1 + $0x38] sm:$0xff]  ;;  %v42_v12 = vld [vmem:[%s262_s1 + $0x30] sm:$0xff]  ;;  %s172_s26 = smov [#allocation2]   ;;  %s126_s29 = sshll.u32 %s265_s4, 4  ;;  %s127_s29 = int_to_ptr.hbm [resolvable:$true] %s126_s29 }
   0x9   :  { %v41_v13 = vld [vmem:[%s262_s1 + $0x28] sm:$0xff]  ;;  %v40_v14 = vld [vmem:[%s262_s1 + $0x20] sm:$0xff]  ;;  %v39_v15 = vld [vmem:[%s262_s1 + $0x18] sm:$0xff]  ;;  %s124_s0 = sshll.u32 %s172_s26, 4  ;;  %s125_s0 = int_to_ptr.vmem [resolvable:$true] %s124_s0 }
   0xa   :  { %56 = vmatpush.msra.mxu0 %v47_v7  ;;  %v38_v16 = vld [vmem:[%s262_s1 + $0x10] sm:$0xff]  ;;  %v37_v17 = vld [vmem:[%s262_s1 + $0x8] sm:$0xff]  ;;  %v36_v18 = vld [vmem:[%s262_s1] sm:$0xff] }
   0xb   :  { %v137_v29 = vld [vmem:[%s264_s3] ss:$0 sm:$0xff]  ;;  %v93_v42 = vld [vmem:[%s263_s2 + $0x8] sm:$0xff] }
   0xc   :  { %57 = vmatpush.msra.mxu0 %v46_v8  ;;  %v92_v43 = vld [vmem:[%s263_s2] sm:$0xff]  ;;  %112 = vmatpush.msra.mxu1 %v93_v42 }
   0xe   :  { %58 = vmatpush.msra.mxu0 %v45_v9  ;;  %113 = vmatpush.msra.mxu1 %v92_v43 }
  0x10   :  { %59 = vmatpush.msra.mxu0 %v44_v10 }
  0x12   :  { %60 = vmatpush.msra.mxu0 %v43_v11 }
  0x14   :  { %61 = vmatpush.msra.mxu0 %v42_v12 }
  0x16   :  { %62 = vmatpush.msra.mxu0 %v41_v13 }
  0x18   :  { %63 = vmatpush.msra.mxu0 %v40_v14 }
  0x1a   :  { %64 = vmatpush.msra.mxu0 %v39_v15 }
  0x1c   :  { %65 = vmatpush.msra.mxu0 %v38_v16 }
  0x1e   :  { %66 = vmatpush.msra.mxu0 %v37_v17 }
  0x20   :  { %67 = vmatpush.msra.mxu0 %v36_v18 }
  0x21   :  { %68 = vmatmul.f32.vlgmr.msra.gmra.mxu0 %v18_v2 }
  0x78   :  { %v23_v19 = vpop.xlane.xlu0 %22 }
  0x79   :  { %138 = vrsqrt.f32 %v23_v19  ;;  %vm31_vm1 = vcmp.eq.f32.partialorder %v23_v19, inf  ;;  %v34_v27 = vand.u32 2147483648, %v23_v19  ;;  %vm33_vm2 = vcmp.eq.f32.partialorder %v23_v19, 0.0 }
  0x7f   :  { %v139_v20 = vpop.eup %138 }
  0x80   :  { %v25_v21 = vmul.f32 %v139_v20, %v23_v19 }
  0x82   :  { %v26_v22 = vmul.f32 %v139_v20, %v25_v21 }
  0x84   :  { %v27_v23 = vmul.f32 0.5, %v26_v22 }
  0x86   :  { %v28_v24 = vsub.f32 1.5, %v27_v23 }
  0x88   :  { %v29_v25 = vmul.f32 %v139_v20, %v28_v24 }
  0x8a   :  { %v30_v26 = vmul.f32 %v29_v25, %v23_v19 }
  0x8c   :  { %v32_v28 = vsel %vm31_vm1, %v23_v19, %v30_v26 }
  0x8d   :  { %v35_v30 = vsel %vm33_vm2, %v34_v27, %v32_v28 }
  0x8e   :  { %v76_v31 = vmul.f32 %v137_v29, %v35_v30 }
  0x90   :  { %v77_v32 = vmax.f32 %v76_v31, 1e-08 }
  0x92   :  { %140 = vrcp.f32 %v77_v32 }
  0x98   :  { %v141_v33 = vpop.eup %140 }
  0x9e   :  { %v69_v34 = vpop.f32.mrf.mxu0 }
  0x9f   :  { %v79_v35 = vmul.f32 %v141_v33, %v69_v34 }
  0xa1   :  { %v81_v36 = vsel %vm80_vm3, %v79_v35, -inf }
  0xa2   :  { %82 = vmax.xlane.f32.xlu0 %v81_v36 }
 0x115   :  { %v83_v37 = vpop.xlane.xlu0 %82 }
 0x116   :  { %v84_v38 = vsub.f32 %v79_v35, %v83_v37 }
 0x118   :  { %v85_v39 = vmul.f32 1.442695, %v84_v38 }
 0x11a   :  { %142 = vpow2.f32 %v85_v39 }
 0x120   :  { %v143_v40 = vpop.eup %142 }
 0x121   :  { %v87_v41 = vsel %vm80_vm3, %v143_v40, 0.0 }
 0x122   :  { %88 = vadd.xlane.f32.xlu1 %v87_v41 }
 0x195   :  { %v89_v44 = vpop.xlane.xlu1 %88 }
 0x196   :  { %144 = vrcp.f32 %v89_v44 }
 0x19c   :  { %v145_v45 = vpop.eup %144 }
 0x19d   :  { %v91_v46 = vmul.f32 %v145_v45, %v143_v40 }
 0x19f   :  { %135 = vmatmul.msk.f32.vlgmr.msra.gmra.mxu1 %vm94_vm4, %v91_v46 }
 0x21c   :  { %v115_v47 = vpop.f32.mrf.mxu1 }
 0x21d   :  { %118 = vst [vmem:[#allocation2] sm:$0x3] %v115_v47 }
 0x21e   :  { %129 = dma.vmem_to_hbm [thread:$0]  %s125_s0, 32, %s127_s29, [#allocation3]  }
 0x21f   :  { %170 = dma.done.wait [#allocation3], 32  }
 0x220   :  { %171 = vsyncadd [#allocation3], 4294967264 }
 0x221   :  { %134 = vsyncpa [#allocation3], 1 }

</bundles_post_ra>
